<compile_context>
chip_gen: v5e
topology: v5e:2x2
jax: 0.10.0
libtpu: 0.0.40
codegen_flags: <defaults>
</compile_context>

<pallas_src>
import math
from typing import NamedTuple

import numpy as np
import jax
import jax.numpy as jnp
from jax.experimental import pallas as pl
from jax.experimental.pallas import tpu as pltpu


# ----------------------------------------------------------------------------
# Kernel
# ----------------------------------------------------------------------------
def lang_layer_kernel(x_ref, w1_ref, bgb_ref, w2_ref, o_ref, h_ref):
    # Grid = (row_tiles, vocab_tiles), vocab innermost.  Build the
    # embed -> GELU -> LayerNorm hidden state once per row tile and cache it
    # (already cast to the head-matmul dtype) in VMEM scratch.
    @pl.when(pl.program_id(1) == 0)
    def _():
        x = x_ref[...]
        h = jnp.dot(x.astype(w1_ref.dtype), w1_ref[...],
                    preferred_element_type=jnp.float32)
        h = h + bgb_ref[0:1, :].astype(jnp.float32)            # embed bias
        # exact (erf) GELU, matching torch.nn.functional.gelu default
        h = 0.5 * h * (1.0 + jax.lax.erf(h * (1.0 / math.sqrt(2.0))))
        # LayerNorm over last dim, eps=1e-5, affine
        mean = jnp.mean(h, axis=-1, keepdims=True)
        var = jnp.mean((h - mean) * (h - mean), axis=-1, keepdims=True)
        h = (h - mean) * jax.lax.rsqrt(var + 1e-5)
        h = (h * bgb_ref[1:2, :].astype(jnp.float32)
             + bgb_ref[2:3, :].astype(jnp.float32))
        h_ref[...] = h.astype(h_ref.dtype)                     # cast once

    # head: Linear(n_embd, n_vocab), no bias -- one vocab tile per grid step.
    o_ref[...] = jnp.dot(h_ref[...], w2_ref[...],
                         preferred_element_type=jnp.float32).astype(o_ref.dtype)


# ----------------------------------------------------------------------------
# Parameter prep (one time, at load)
# ----------------------------------------------------------------------------
class LangLayerParams(NamedTuple):
    w1: jax.Array    # (n_embd, n_embd), (in, out) layout
    bgb: jax.Array   # (3, n_embd): [embed bias; ln gamma; ln beta], f32
    w2: jax.Array    # (n_embd, n_vocab_padded), (in, out) layout
    n_vocab: int     # original (unpadded) vocab size


def _round_up(a, b):
    return (a + b - 1) // b * b


def prepare_params(w_embed, b_embed, ln_gamma, ln_beta, w_head, *,
                   param_dtype=None, vocab_multiple=None):
    """One-time conversion from PyTorch (out, in) Linear layout to the kernel
    layout.  Do this at load time, not per call:
      * weights transposed to (in, out),
      * bias/gamma/beta stacked into one (3, n_embd) f32 operand,
      * head weight zero-padded once along vocab to a tile-friendly multiple
        (so no per-call padding / extra HBM pass over w2),
      * optional cast of the matmul weights (bf16 recommended on v5e/v6e/v7x;
        accumulation and GELU/LayerNorm math stay f32 in the kernel)."""
    w1 = jnp.asarray(w_embed).T
    w2 = jnp.asarray(w_head).T
    n_vocab = w2.shape[1]
    if param_dtype is not None:
        w1 = w1.astype(param_dtype)
        w2 = w2.astype(param_dtype)
    if vocab_multiple is None:
        vocab_multiple = 1024 if n_vocab >= 8192 else 256
    n_pad = _round_up(n_vocab, vocab_multiple) - n_vocab
    if n_pad:
        w2 = jnp.pad(w2, ((0, 0), (0, n_pad)))
    bgb = jnp.stack([jnp.asarray(b_embed), jnp.asarray(ln_gamma),
                     jnp.asarray(ln_beta)]).astype(jnp.float32)
    return LangLayerParams(w1=w1, bgb=bgb, w2=w2, n_vocab=n_vocab)


# ----------------------------------------------------------------------------
# Tile / VMEM budgeting
# ----------------------------------------------------------------------------
def _vmem_budget_bytes():
    # Generation-aware cap: ~85% of physical VMEM (128 MiB on v5e/v6e,
    # 64 MiB per TensorCore on v7x).  Conservative fallback if unavailable.
    try:
        cap = getattr(pltpu.get_tpu_info(), "vmem_capacity_bytes", None)
    except Exception:
        cap = None
    if not cap:
        cap = 64 << 20
    return int(cap * 0.85)


def _footprint_bytes(tm, tn, n_embd, x_itemsize, w_itemsize, out_itemsize):
    invariant = (n_embd * n_embd * w_itemsize        # embed W, single-buffered
                 + 8 * max(n_embd, 128) * 4)         # fused bias/gamma/beta
    streamed = 2 * (tm * n_embd * x_itemsize         # x row tile
                    + n_embd * tn * w_itemsize       # head-W vocab tile
                    + tm * tn * out_itemsize)        # logits tile
    scratch = tm * n_embd * w_itemsize               # cached hidden state
    return invariant + streamed + scratch


def _select_tiles(M, Np, n_embd, tm_req, tn_req,
                  x_itemsize, w_itemsize, out_itemsize, budget):
    # tn must divide the (pre-padded) vocab and stay lane-aligned (x128).
    tn_max = min(_round_up(tn_req, 128), Np)
    tn_opts = [d for d in range(tn_max, 0, -128) if Np % d == 0] or [Np]
    ti, tn = 0, tn_opts[0]
    tm = max(8, min(_round_up(tm_req, 8), _round_up(M, 8)))
    while _footprint_bytes(tm, tn, n_embd, x_itemsize, w_itemsize,
                           out_itemsize) > budget:
        if ti + 1 < len(tn_opts) and tn >= tm:
            ti += 1
            tn = tn_opts[ti]
        elif tm > 8:
            tm = max(8, _round_up(tm // 2, 8))
        elif ti + 1 < len(tn_opts):
            ti += 1
            tn = tn_opts[ti]
        else:
            break  # w1 alone exceeds the budget -> see K-tiling TODO above
    return tm, tn


# ----------------------------------------------------------------------------
# Wrapper
# ----------------------------------------------------------------------------
def lang_layer(x, params: LangLayerParams, *, tm=1024, tn=1024, out_dtype=None):
    """x: (batch, seq, n_embd); params from prepare_params().
    Returns (batch, seq, n_vocab) logits in out_dtype (default x.dtype).
    bf16 weights / bf16 out_dtype trade ~1e-2-level precision for speed."""
    w1, bgb, w2, n_vocab = params
    batch, seq, n_embd = x.shape
    Np = w2.shape[1]
    M = batch * seq
    out_dtype = jnp.dtype(out_dtype if out_dtype is not None else x.dtype)

    x_isz = jnp.dtype(x.dtype).itemsize
    w_isz = jnp.dtype(w2.dtype).itemsize
    o_isz = out_dtype.itemsize

    budget = _vmem_budget_bytes()
    tm, tn = _select_tiles(M, Np, n_embd, tm, tn, x_isz, w_isz, o_isz, budget)
    Mp = _round_up(M, tm)

    x2d = x.reshape(M, n_embd)
    if Mp != M:
        x2d = jnp.pad(x2d, ((0, Mp - M), (0, 0)))

    grid = (Mp // tm, Np // tn)
    footprint = _footprint_bytes(tm, tn, n_embd, x_isz, w_isz, o_isz)
    vmem_limit = int(min(budget,
                         max(footprint + footprint // 4 + (2 << 20), 32 << 20)))

    def run(single_buffer_invariants):
        inv = ({"pipeline_mode": pl.Buffered(1)}
               if single_buffer_invariants else {})
        return pl.pallas_call(
            lang_layer_kernel,
            out_shape=jax.ShapeDtypeStruct((Mp, Np), out_dtype),
            grid_spec=pltpu.PrefetchScalarGridSpec(
                num_scalar_prefetch=0,
                grid=grid,
                in_specs=[
                    pl.BlockSpec((tm, n_embd), lambda i, j: (i, 0)),   # x rows
                    pl.BlockSpec((n_embd, n_embd),                     # embed W
                                 lambda i, j: (0, 0), **inv),
                    pl.BlockSpec((3, n_embd),                          # b/g/beta
                                 lambda i, j: (0, 0), **inv),
                    pl.BlockSpec((n_embd, tn), lambda i, j: (0, j)),   # head W
                ],
                out_specs=pl.BlockSpec((tm, tn), lambda i, j: (i, j)),
                scratch_shapes=[pltpu.VMEM((tm, n_embd), w2.dtype)],   # cached h
            ),
            compiler_params=pltpu.CompilerParams(
                # Vocab axis MUST stay "arbitrary": the hidden-state cache is
                # only built at vocab-tile index 0 (see kernel).
                dimension_semantics=("parallel", "arbitrary"),
                vmem_limit_bytes=vmem_limit),
        )(x2d, w1, bgb, w2)

    try:
        out2d = run(True)
    except Exception:
        # Fallback for jax versions without pl.Buffered(1) single-buffering.
        out2d = run(False)

    if Mp != M or Np != n_vocab:
        out2d = out2d[:M, :n_vocab]
    return out2d.reshape(batch, seq, n_vocab)


# ----------------------------------------------------------------------------
# Pure-JAX reference (PyTorch (out, in) weight layout)
# ----------------------------------------------------------------------------
def lang_layer_ref(x, w_embed, b_embed, ln_gamma, ln_beta, w_head):
    h = x @ w_embed.T + b_embed
    h = 0.5 * h * (1.0 + jax.lax.erf(h / jnp.sqrt(2.0)))
    mean = jnp.mean(h, axis=-1, keepdims=True)
    var = jnp.mean((h - mean) ** 2, axis=-1, keepdims=True)
    h = (h - mean) * jax.lax.rsqrt(var + 1e-5)
    h = h * ln_gamma + ln_beta
    return h @ w_head.T


if __name__ == "__main__":
    batch, seq, n_embd, n_vocab = 2, 7, 32, 256   # M=14 exercises row padding

    key = jax.random.PRNGKey(0)
    kx, kw1, kb1, kw2 = jax.random.split(key, 4)

    x = jax.random.normal(kx, (batch, seq, n_embd), dtype=jnp.float32)

    # Deterministic synthetic parameters (shapes match nn.Linear / nn.LayerNorm).
    bound = 1.0 / math.sqrt(n_embd)
    w_embed = jax.random.uniform(kw1, (n_embd, n_embd), jnp.float32,
                                 -bound, bound)            # (out, in)
    b_embed = jax.random.uniform(kb1, (n_embd,), jnp.float32, -bound, bound)
    ln_gamma = jnp.ones((n_embd,), jnp.float32)
    ln_beta = jnp.zeros((n_embd,), jnp.float32)
    w_head = jax.random.uniform(kw2, (n_vocab, n_embd), jnp.float32,
                                -bound, bound)             # (out, in)

    ref = lang_layer_ref(x, w_embed, b_embed, ln_gamma, ln_beta, w_head)

    # One-time layout prep (load time): transpose, fuse bias/gamma/beta,
    # pad the head-weight vocab dim once.
    params_f32 = prepare_params(w_embed, b_embed, ln_gamma, ln_beta, w_head)

    # 1) Default (large) tiles; auto-shrunk to this small demo problem.
    out = jax.block_until_ready(lang_layer(x, params_f32))
    np.testing.assert_allclose(np.asarray(out), np.asarray(ref),
                               rtol=1e-5, atol=1e-5)

    # 2) Force a multi-tile grid (2 row tiles x 2 vocab tiles) to exercise the
    #    hidden-state cache reuse and the row-padding path.
    out_t = jax.block_until_ready(lang_layer(x, params_f32, tm=8, tn=128))
    np.testing.assert_allclose(np.asarray(out_t), np.asarray(ref),
                               rtol=1e-5, atol=1e-5)

    # 3) bf16 weights + bf16 logits (recommended on v6e/v7x): same kernel,
    #    f32 accumulate and f32 GELU/LayerNorm math.
    params_bf16 = prepare_params(w_embed, b_embed, ln_gamma, ln_beta, w_head,
                                 param_dtype=jnp.bfloat16)
    out_bf16 = jax.block_until_ready(
        lang_layer(x, params_bf16, tm=8, tn=128, out_dtype=jnp.bfloat16))
    np.testing.assert_allclose(np.asarray(out_bf16).astype(np.float32),
                               np.asarray(ref), rtol=5e-2, atol=5e-2)

    print("KERNEL_OK")
</pallas_src>

<mosaic_0001>
module attributes {stable_mosaic.version = 11 : i64} {
  func.func @lang_layer_kernel(%arg0: i32, %arg1: i32, %arg2: memref<16x32xf32, #tpu.memory_space<vmem>>, %arg3: memref<32x32xf32, #tpu.memory_space<vmem>>, %arg4: memref<3x32xf32, #tpu.memory_space<vmem>>, %arg5: memref<32x256xf32, #tpu.memory_space<vmem>>, %arg6: memref<16x256xf32, #tpu.memory_space<vmem>>, %arg7: memref<16x32xf32, #tpu.memory_space<vmem>>) attributes {dimension_semantics = [#tpu.dimension_semantics<parallel>, #tpu.dimension_semantics<arbitrary>], iteration_bounds = array<i64: 1, 1>, scalar_prefetch = 0 : i64, scratch_operands = 1 : i64, tpu.core_type = #tpu.core_type<tc>, window_params = [{transform_indices = @transform_0, window_bounds = array<i64: 16, 32>}, {pipeline_mode = #tpu.pipeline_mode<synchronous>, transform_indices = @transform_1, window_bounds = array<i64: 32, 32>}, {pipeline_mode = #tpu.pipeline_mode<synchronous>, transform_indices = @transform_2, window_bounds = array<i64: 3, 32>}, {transform_indices = @transform_3, window_bounds = array<i64: 32, 256>}, {transform_indices = @transform_4, window_bounds = array<i64: 16, 256>}]} {
    %c0_i32 = arith.constant 0 : i32
    %0 = arith.cmpi eq, %arg1, %c0_i32 : i32
    %1 = arith.extui %0 : i1 to i32
    %c0_i32_0 = arith.constant 0 : i32
    %2 = arith.cmpi ne, %1, %c0_i32_0 : i32
    scf.if %2 {
      %c0_6 = arith.constant 0 : index
      %c0_7 = arith.constant 0 : index
      %7 = vector.load %arg2[%c0_6, %c0_7] : memref<16x32xf32, #tpu.memory_space<vmem>>, vector<16x32xf32>
      %c0_8 = arith.constant 0 : index
      %c0_9 = arith.constant 0 : index
      %8 = vector.load %arg3[%c0_8, %c0_9] : memref<32x32xf32, #tpu.memory_space<vmem>>, vector<32x32xf32>
      %cst_10 = arith.constant dense<0.000000e+00> : vector<16x32xf32>
      %9 = tpu.matmul %7, %8, %cst_10 {dimension_numbers = #tpu.dot_dimension_numbers<[1], [0], [0], [1], [0, 0, 1, 1], [], []>} : vector<16x32xf32>, vector<32x32xf32>, vector<16x32xf32> -> vector<16x32xf32>
      %c0_11 = arith.constant 0 : index
      %c0_12 = arith.constant 0 : index
      %10 = vector.load %arg4[%c0_11, %c0_12] : memref<3x32xf32, #tpu.memory_space<vmem>>, vector<1x32xf32>
      %11 = vector.broadcast %10 : vector<1x32xf32> to vector<16x32xf32>
      %12 = arith.addf %9, %11 : vector<16x32xf32>
      %cst_13 = arith.constant 5.000000e-01 : f32
      %13 = vector.broadcast %cst_13 : f32 to vector<16x32xf32>
      %14 = arith.mulf %13, %12 : vector<16x32xf32>
      %cst_14 = arith.constant 0.707106769 : f32
      %15 = vector.broadcast %cst_14 : f32 to vector<16x32xf32>
      %16 = arith.mulf %12, %15 : vector<16x32xf32>
      %17 = math.erf %16 : vector<16x32xf32>
      %cst_15 = arith.constant 1.000000e+00 : f32
      %18 = vector.broadcast %cst_15 : f32 to vector<16x32xf32>
      %19 = arith.addf %18, %17 : vector<16x32xf32>
      %20 = arith.mulf %14, %19 : vector<16x32xf32>
      %cst_16 = arith.constant dense<0.000000e+00> : vector<16xf32>
      %21 = vector.multi_reduction <add>, %20, %cst_16 [1] : vector<16x32xf32> to vector<16xf32>
      %22 = vector.shape_cast %21 : vector<16xf32> to vector<16x1xf32>
      %cst_17 = arith.constant 3.200000e+01 : f32
      %23 = vector.broadcast %cst_17 : f32 to vector<16x1xf32>
      %24 = arith.divf %22, %23 : vector<16x1xf32>
      %25 = vector.broadcast %24 : vector<16x1xf32> to vector<16x32xf32>
      %26 = arith.subf %20, %25 : vector<16x32xf32>
      %27 = vector.broadcast %24 : vector<16x1xf32> to vector<16x32xf32>
      %28 = arith.subf %20, %27 : vector<16x32xf32>
      %29 = arith.mulf %26, %28 : vector<16x32xf32>
      %cst_18 = arith.constant dense<0.000000e+00> : vector<16xf32>
      %30 = vector.multi_reduction <add>, %29, %cst_18 [1] : vector<16x32xf32> to vector<16xf32>
      %31 = vector.shape_cast %30 : vector<16xf32> to vector<16x1xf32>
      %cst_19 = arith.constant 3.200000e+01 : f32
      %32 = vector.broadcast %cst_19 : f32 to vector<16x1xf32>
      %33 = arith.divf %31, %32 : vector<16x1xf32>
      %34 = vector.broadcast %24 : vector<16x1xf32> to vector<16x32xf32>
      %35 = arith.subf %20, %34 : vector<16x32xf32>
      %cst_20 = arith.constant 9.99999974E-6 : f32
      %36 = vector.broadcast %cst_20 : f32 to vector<16x1xf32>
      %37 = arith.addf %33, %36 : vector<16x1xf32>
      %38 = math.rsqrt %37 : vector<16x1xf32>
      %39 = vector.broadcast %38 : vector<16x1xf32> to vector<16x32xf32>
      %40 = arith.mulf %35, %39 : vector<16x32xf32>
      %c1 = arith.constant 1 : index
      %c0_21 = arith.constant 0 : index
      %41 = vector.load %arg4[%c1, %c0_21] : memref<3x32xf32, #tpu.memory_space<vmem>>, vector<1x32xf32>
      %42 = vector.broadcast %41 : vector<1x32xf32> to vector<16x32xf32>
      %43 = arith.mulf %40, %42 : vector<16x32xf32>
      %c2 = arith.constant 2 : index
      %c0_22 = arith.constant 0 : index
      %44 = vector.load %arg4[%c2, %c0_22] : memref<3x32xf32, #tpu.memory_space<vmem>>, vector<1x32xf32>
      %45 = vector.broadcast %44 : vector<1x32xf32> to vector<16x32xf32>
      %46 = arith.addf %43, %45 : vector<16x32xf32>
      %c0_23 = arith.constant 0 : index
      %c0_24 = arith.constant 0 : index
      %47 = vector.load %arg7[%c0_23, %c0_24] : memref<16x32xf32, #tpu.memory_space<vmem>>, vector<16x32xf32>
      tpu.vector_store %arg7[%c0_23, %c0_24], %46 {strides = array<i32>} : memref<16x32xf32, #tpu.memory_space<vmem>>, vector<16x32xf32>,
    } else {
    }
    %c0 = arith.constant 0 : index
    %c0_1 = arith.constant 0 : index
    %3 = vector.load %arg7[%c0, %c0_1] : memref<16x32xf32, #tpu.memory_space<vmem>>, vector<16x32xf32>
    %c0_2 = arith.constant 0 : index
    %c0_3 = arith.constant 0 : index
    %4 = vector.load %arg5[%c0_2, %c0_3] : memref<32x256xf32, #tpu.memory_space<vmem>>, vector<32x256xf32>
    %cst = arith.constant dense<0.000000e+00> : vector<16x256xf32>
    %5 = tpu.matmul %3, %4, %cst {dimension_numbers = #tpu.dot_dimension_numbers<[1], [0], [0], [1], [0, 0, 1, 1], [], []>} : vector<16x32xf32>, vector<32x256xf32>, vector<16x256xf32> -> vector<16x256xf32>
    %c0_4 = arith.constant 0 : index
    %c0_5 = arith.constant 0 : index
    %6 = vector.load %arg6[%c0_4, %c0_5] : memref<16x256xf32, #tpu.memory_space<vmem>>, vector<16x256xf32>
    tpu.vector_store %arg6[%c0_4, %c0_5], %5 {strides = array<i32>} : memref<16x256xf32, #tpu.memory_space<vmem>>, vector<16x256xf32>,
    return
  }
  func.func @transform_0(%arg0: i32, %arg1: i32) -> (i32, i32) {
    %c0_i32 = arith.constant 0 : i32
    %c0_i32_0 = arith.constant 0 : i32
    return %arg0, %c0_i32 : i32, i32
  }
  func.func @transform_1(%arg0: i32, %arg1: i32) -> (i32, i32) {
    %c0_i32 = arith.constant 0 : i32
    %c0_i32_0 = arith.constant 0 : i32
    %c0_i32_1 = arith.constant 0 : i32
    return %c0_i32, %c0_i32_0 : i32, i32
  }
  func.func @transform_2(%arg0: i32, %arg1: i32) -> (i32, i32) {
    %c0_i32 = arith.constant 0 : i32
    %c0_i32_0 = arith.constant 0 : i32
    %c0_i32_1 = arith.constant 0 : i32
    return %c0_i32, %c0_i32_0 : i32, i32
  }
  func.func @transform_3(%arg0: i32, %arg1: i32) -> (i32, i32) {
    %c0_i32 = arith.constant 0 : i32
    %c0_i32_0 = arith.constant 0 : i32
    return %c0_i32, %arg1 : i32, i32
  }
  func.func @transform_4(%arg0: i32, %arg1: i32) -> (i32, i32) {
    %c0_i32 = arith.constant 0 : i32
    return %arg0, %arg1 : i32, i32
  }
}

module attributes {stable_mosaic.version = 11 : i64} {
  func.func @lang_layer_kernel(%arg0: i32, %arg1: i32, %arg2: memref<16x32xf32, #tpu.memory_space<vmem>>, %arg3: memref<32x32xf32, #tpu.memory_space<vmem>>, %arg4: memref<3x32xf32, #tpu.memory_space<vmem>>, %arg5: memref<32x256xf32, #tpu.memory_space<vmem>>, %arg6: memref<16x256xf32, #tpu.memory_space<vmem>>, %arg7: memref<16x32xf32, #tpu.memory_space<vmem>>) attributes {dimension_semantics = [#tpu.dimension_semantics<parallel>, #tpu.dimension_semantics<arbitrary>], iteration_bounds = array<i64: 1, 1>, scalar_prefetch = 0 : i64, scratch_operands = 1 : i64, tpu.core_type = #tpu.core_type<tc>, window_params = [{transform_indices = @transform_0, window_bounds = array<i64: 16, 32>}, {pipeline_mode = #tpu.pipeline_mode<synchronous>, transform_indices = @transform_1, window_bounds = array<i64: 32, 32>}, {pipeline_mode = #tpu.pipeline_mode<synchronous>, transform_indices = @transform_2, window_bounds = array<i64: 3, 32>}, {transform_indices = @transform_3, window_bounds = array<i64: 32, 256>}, {transform_indices = @transform_4, window_bounds = array<i64: 16, 256>}]} {
    %c0_i32 = arith.constant 0 : i32
    %0 = arith.cmpi eq, %arg1, %c0_i32 : i32
    %1 = arith.extui %0 : i1 to i32
    %c0_i32_0 = arith.constant 0 : i32
    %2 = arith.cmpi ne, %1, %c0_i32_0 : i32
    scf.if %2 {
      %c0_6 = arith.constant 0 : index
      %c0_7 = arith.constant 0 : index
      %7 = vector.load %arg2[%c0_6, %c0_7] : memref<16x32xf32, #tpu.memory_space<vmem>>, vector<16x32xf32>
      %c0_8 = arith.constant 0 : index
      %c0_9 = arith.constant 0 : index
      %8 = vector.load %arg3[%c0_8, %c0_9] : memref<32x32xf32, #tpu.memory_space<vmem>>, vector<32x32xf32>
      %cst_10 = arith.constant dense<0.000000e+00> : vector<16x32xf32>
      %9 = tpu.matmul %7, %8, %cst_10 {dimension_numbers = #tpu.dot_dimension_numbers<[1], [0], [0], [1], [0, 0, 1, 1], [], []>} : vector<16x32xf32>, vector<32x32xf32>, vector<16x32xf32> -> vector<16x32xf32>
      %c0_11 = arith.constant 0 : index
      %c0_12 = arith.constant 0 : index
      %10 = vector.load %arg4[%c0_11, %c0_12] : memref<3x32xf32, #tpu.memory_space<vmem>>, vector<1x32xf32>
      %11 = vector.broadcast %10 : vector<1x32xf32> to vector<16x32xf32>
      %12 = arith.addf %9, %11 : vector<16x32xf32>
      %cst_13 = arith.constant 5.000000e-01 : f32
      %13 = vector.broadcast %cst_13 : f32 to vector<16x32xf32>
      %14 = arith.mulf %13, %12 : vector<16x32xf32>
      %cst_14 = arith.constant 0.707106769 : f32
      %15 = vector.broadcast %cst_14 : f32 to vector<16x32xf32>
      %16 = arith.mulf %12, %15 : vector<16x32xf32>
      %17 = math.erf %16 : vector<16x32xf32>
      %cst_15 = arith.constant 1.000000e+00 : f32
      %18 = vector.broadcast %cst_15 : f32 to vector<16x32xf32>
      %19 = arith.addf %18, %17 : vector<16x32xf32>
      %20 = arith.mulf %14, %19 : vector<16x32xf32>
      %cst_16 = arith.constant dense<0.000000e+00> : vector<16xf32>
      %21 = vector.multi_reduction <add>, %20, %cst_16 [1] : vector<16x32xf32> to vector<16xf32>
      %22 = vector.shape_cast %21 : vector<16xf32> to vector<16x1xf32>
      %cst_17 = arith.constant 3.200000e+01 : f32
      %23 = vector.broadcast %cst_17 : f32 to vector<16x1xf32>
      %24 = arith.divf %22, %23 : vector<16x1xf32>
      %25 = vector.broadcast %24 : vector<16x1xf32> to vector<16x32xf32>
      %26 = arith.subf %20, %25 : vector<16x32xf32>
      %27 = vector.broadcast %24 : vector<16x1xf32> to vector<16x32xf32>
      %28 = arith.subf %20, %27 : vector<16x32xf32>
      %29 = arith.mulf %26, %28 : vector<16x32xf32>
      %cst_18 = arith.constant dense<0.000000e+00> : vector<16xf32>
      %30 = vector.multi_reduction <add>, %29, %cst_18 [1] : vector<16x32xf32> to vector<16xf32>
      %31 = vector.shape_cast %30 : vector<16xf32> to vector<16x1xf32>
      %cst_19 = arith.constant 3.200000e+01 : f32
      %32 = vector.broadcast %cst_19 : f32 to vector<16x1xf32>
      %33 = arith.divf %31, %32 : vector<16x1xf32>
      %34 = vector.broadcast %24 : vector<16x1xf32> to vector<16x32xf32>
      %35 = arith.subf %20, %34 : vector<16x32xf32>
      %cst_20 = arith.constant 9.99999974E-6 : f32
      %36 = vector.broadcast %cst_20 : f32 to vector<16x1xf32>
      %37 = arith.addf %33, %36 : vector<16x1xf32>
      %38 = math.rsqrt %37 : vector<16x1xf32>
      %39 = vector.broadcast %38 : vector<16x1xf32> to vector<16x32xf32>
      %40 = arith.mulf %35, %39 : vector<16x32xf32>
      %c1 = arith.constant 1 : index
      %c0_21 = arith.constant 0 : index
      %41 = vector.load %arg4[%c1, %c0_21] : memref<3x32xf32, #tpu.memory_space<vmem>>, vector<1x32xf32>
      %42 = vector.broadcast %41 : vector<1x32xf32> to vector<16x32xf32>
      %43 = arith.mulf %40, %42 : vector<16x32xf32>
      %c2 = arith.constant 2 : index
      %c0_22 = arith.constant 0 : index
      %44 = vector.load %arg4[%c2, %c0_22] : memref<3x32xf32, #tpu.memory_space<vmem>>, vector<1x32xf32>
      %45 = vector.broadcast %44 : vector<1x32xf32> to vector<16x32xf32>
      %46 = arith.addf %43, %45 : vector<16x32xf32>
      %c0_23 = arith.constant 0 : index
      %c0_24 = arith.constant 0 : index
      %47 = vector.load %arg7[%c0_23, %c0_24] : memref<16x32xf32, #tpu.memory_space<vmem>>, vector<16x32xf32>
      tpu.vector_store %arg7[%c0_23, %c0_24], %46 {strides = array<i32>} : memref<16x32xf32, #tpu.memory_space<vmem>>, vector<16x32xf32>,
    } else {
    }
    %c0 = arith.constant 0 : index
    %c0_1 = arith.constant 0 : index
    %3 = vector.load %arg7[%c0, %c0_1] : memref<16x32xf32, #tpu.memory_space<vmem>>, vector<16x32xf32>
    %c0_2 = arith.constant 0 : index
    %c0_3 = arith.constant 0 : index
    %4 = vector.load %arg5[%c0_2, %c0_3] : memref<32x256xf32, #tpu.memory_space<vmem>>, vector<32x256xf32>
    %cst = arith.constant dense<0.000000e+00> : vector<16x256xf32>
    %5 = tpu.matmul %3, %4, %cst {dimension_numbers = #tpu.dot_dimension_numbers<[1], [0], [0], [1], [0, 0, 1, 1], [], []>} : vector<16x32xf32>, vector<32x256xf32>, vector<16x256xf32> -> vector<16x256xf32>
    %c0_4 = arith.constant 0 : index
    %c0_5 = arith.constant 0 : index
    %6 = vector.load %arg6[%c0_4, %c0_5] : memref<16x256xf32, #tpu.memory_space<vmem>>, vector<16x256xf32>
    tpu.vector_store %arg6[%c0_4, %c0_5], %5 {strides = array<i32>} : memref<16x256xf32, #tpu.memory_space<vmem>>, vector<16x256xf32>,
    return
  }
  func.func @transform_0(%arg0: i32, %arg1: i32) -> (i32, i32) {
    %c0_i32 = arith.constant 0 : i32
    %c0_i32_0 = arith.constant 0 : i32
    return %arg0, %c0_i32 : i32, i32
  }
  func.func @transform_1(%arg0: i32, %arg1: i32) -> (i32, i32) {
    %c0_i32 = arith.constant 0 : i32
    %c0_i32_0 = arith.constant 0 : i32
    %c0_i32_1 = arith.constant 0 : i32
    return %c0_i32, %c0_i32_0 : i32, i32
  }
  func.func @transform_2(%arg0: i32, %arg1: i32) -> (i32, i32) {
    %c0_i32 = arith.constant 0 : i32
    %c0_i32_0 = arith.constant 0 : i32
    %c0_i32_1 = arith.constant 0 : i32
    return %c0_i32, %c0_i32_0 : i32, i32
  }
  func.func @transform_3(%arg0: i32, %arg1: i32) -> (i32, i32) {
    %c0_i32 = arith.constant 0 : i32
    %c0_i32_0 = arith.constant 0 : i32
    return %c0_i32, %arg1 : i32, i32
  }
  func.func @transform_4(%arg0: i32, %arg1: i32) -> (i32, i32) {
    %c0_i32 = arith.constant 0 : i32
    return %arg0, %arg1 : i32, i32
  }
}

</mosaic_0001>

<bundles_post_ra>
// kernel: tpu_custom_call.1
= control target key start
LH: loop header
LB: loop body
LE: loop exit
PB: predicated region body
PF: predicated region fallthrough
CT: control target
= control target key end

     0   :  { %9 = vsyncpa [#allocation4], 0  ;;  %s602_s0 = inlined_call_operand.hbm [shape: f32[16,32], index: 0, kind: input, shape index: {}]   ;;  %s603_s1 = inlined_call_operand.hbm [shape: f32[32,32], index: 1, kind: input, shape index: {}]   ;;  %s604_s2 = inlined_call_operand.hbm [shape: f32[3,32], index: 2, kind: input, shape index: {}]   ;;  %s605_s3 = inlined_call_operand.hbm [shape: f32[32,256], index: 3, kind: input, shape index: {}]   ;;  %s606_s4 = inlined_call_operand.hbm [shape: f32[16,256], index: 4, kind: output, shape index: {}]  }
   0x1   :  { %10 = vsyncpa [#allocation7], 0 }
   0x2   :  { %11 = vsyncpa [#allocation10], 0 }
   0x3   :  { %12 = vsyncpa [#allocation5], 0  ;;  %s30_s17 = sshll.u32 %s603_s1, 4  ;;  %s521_s18 = smov [#allocation6]   ;;  %s31_s17 = int_to_ptr.hbm [resolvable:$true] %s30_s17 }
   0x4   :  { %s32_s19 = sshll.u32 %s521_s18, 4  ;;  %s17_s22 = sshll.u32 %s602_s0, 4  ;;  %s33_s19 = int_to_ptr.vmem [resolvable:$true] %s32_s19  ;;  %s18_s22 = int_to_ptr.hbm [resolvable:$true] %s17_s22 }
   0x5   :  { %s522_s23 = smov 128   ;;  %s523_s24 = smov 8  }
   0x6   :  { %38 = dma.hbm_to_vmem [thread:$0]  %s31_s17, 512, %s33_s19, [#allocation7], %s522_s23, %s522_s23, %s523_s24  }
   0x7   :  { %s524_s25 = smov [#allocation3]   ;;  %s44_s29 = sshll.u32 %s604_s2, 4  ;;  %s45_s29 = int_to_ptr.hbm [resolvable:$true] %s44_s29 }
   0x8   :  { %s19_s26 = sshll.u32 %s524_s25, 4  ;;  %s54_s5 = sshll.u32 %s605_s3, 4  ;;  %s20_s26 = int_to_ptr.vmem [resolvable:$true] %s19_s26  ;;  %s55_s5 = int_to_ptr.hbm [resolvable:$true] %s54_s5 }
   0x9   :  { %25 = dma.hbm_to_vmem [thread:$0]  %s18_s22, 256, %s20_s26, [#allocation4], %s522_s23, %s522_s23, %s523_s24  }
   0xa   :  { %s525_s6 = smov [#allocation8]   ;;  %s526_s0 = smov [#allocation9]  }
   0xb   :  { %s46_s7 = sshll.u32 %s525_s6, 4  ;;  %s56_s8 = sshll.u32 %s526_s0, 4  ;;  %s47_s7 = int_to_ptr.vmem [resolvable:$true] %s46_s7  ;;  %s57_s8 = int_to_ptr.vmem [resolvable:$true] %s56_s8 }
   0xc   :  { %49 = dma.hbm_to_vmem [thread:$0]  %s45_s29, 64, %s47_s7, [#allocation7]  }
   0xd   :  { %s527_s9 = smov 256   ;;  %s528_s10 = smov 16  }
   0xe   :  { %62 = dma.hbm_to_vmem [thread:$0]  %s55_s5, 1024, %s57_s8, [#allocation10], %s527_s9, %s527_s9, %s528_s10  }
   0xf   :  { %513 = dma.done.wait [#allocation4], 256  }
  0x10   :  { %514 = vsyncadd [#allocation4], 4294967040 }
  0x11   :  { %515 = dma.done.wait [#allocation7], 576  }
  0x12   :  { %516 = vsyncadd [#allocation7], 4294966720 }
  0x13   :  { %517 = dma.done.wait [#allocation10], 1024  }
  0x14   :  { %518 = vsyncadd [#allocation10], 4294966272  ;;  %v88_v0 = vld [vmem:[#allocation6 + $0x18] sm:$0xff]  ;;  %v87_v1 = vld [vmem:[#allocation6 + $0x10] sm:$0xff]  ;;  %vm91_vm0 = vcmask 261120   ;;  %s530_s2 = smov [#allocation11]  }
  0x15   :  { %110 = vmatpush.msra.mxu0 %v88_v0  ;;  %366 = vmatpush.msra.mxu3 %v88_v0  ;;  %v86_v2 = vld [vmem:[#allocation6 + $0x8] sm:$0xff]  ;;  %v85_v3 = vld [vmem:[#allocation6] sm:$0xff]  ;;  %v83_v4 = vld [vmem:[#allocation3] sm:$0xff]  ;;  %s341_s3 = sshll.u32 %s530_s2, 4  ;;  %s343_s13 = sshll.u32 %s606_s4, 4  ;;  %s342_s3 = int_to_ptr.vmem [resolvable:$true] %s341_s3  ;;  %s344_s13 = int_to_ptr.hbm [resolvable:$true] %s343_s13 }
  0x16   :  { %v84_v5 = vld [vmem:[#allocation3 + $0x8] sm:$0xff]  ;;  %v380_v6 = vld [vmem:[#allocation8] ss:$0 sm:$0xff] }
  0x17   :  { %111 = vmatpush.msra.mxu0 %v87_v1  ;;  %367 = vmatpush.msra.mxu3 %v87_v1 }
  0x19   :  { %112 = vmatpush.msra.mxu0 %v86_v2  ;;  %368 = vmatpush.msra.mxu3 %v86_v2 }
  0x1b   :  { %113 = vmatpush.msra.mxu0 %v85_v3  ;;  %369 = vmatpush.msra.mxu3 %v85_v3 }
  0x1c   :  { %358 = vmatmul.msk.f32.vlgmr.msra.gmra.mxu0 %vm91_vm0, %v83_v4  ;;  %359 = vmatmul.msk.f32.vlgmr.msra.gmra.mxu3 %vm91_vm0, %v84_v5 }
  0x99   :  { %v115_v7 = vpop.f32.mrf.mxu0 }
  0x9a   :  { %v573_v8 = vadd.f32 %v380_v6, %v115_v7 }
  0x9c   :  { %v123_v9 = vmul.f32 0.70710677, %v573_v8 }
  0x9e   :  { %v125_v10 = vmul.f32 %v123_v9, %v123_v9 }
  0x9f   :  { %v118_v11 = vpop.f32.mrf.mxu3 }
  0xa0   :  { %v126_v12 = vmin.f32 %v125_v10, 16.0  ;;  %v576_v13 = vadd.f32 %v380_v6, %v118_v11 }
  0xa2   :  { %v127_v14 = vmul.f32 2.1237322e-06, %v126_v12  ;;  %v579_v15 = vmul.f32 0.70710677, %v576_v13  ;;  %v138_v16 = vmul.f32 3.8918573e-05, %v126_v12 }
  0xa4   :  { %v128_v17 = vadd.f32 0.00028619796, %v127_v14  ;;  %v165_v18 = vmul.f32 %v579_v15, %v579_v15  ;;  %v139_v19 = vadd.f32 0.001143296, %v138_v16 }
  0xa6   :  { %v129_v20 = vmul.f32 %v128_v17, %v126_v12  ;;  %v166_v21 = vmin.f32 %v165_v18, 16.0  ;;  %v140_v22 = vmul.f32 %v139_v19, %v126_v12  ;;  %v121_v19 = vmul.f32 0.5, %v573_v8 }
  0xa8   :  { %v167_v23 = vmul.f32 2.1237322e-06, %v166_v21  ;;  %v178_v24 = vmul.f32 3.8918573e-05, %v166_v21  ;;  %v130_v25 = vadd.f32 0.0036580483, %v129_v20 }
  0xa9   :  { %v141_v26 = vadd.f32 0.014752088, %v140_v22 }
  0xaa   :  { %v168_v27 = vadd.f32 0.00028619796, %v167_v23  ;;  %v179_v28 = vadd.f32 0.001143296, %v178_v24  ;;  %v131_v32 = vmul.f32 %v130_v25, %v126_v12 }
  0xab   :  { %v142_v29 = vmul.f32 %v141_v26, %v126_v12 }
  0xac   :  { %v169_v30 = vmul.f32 %v168_v27, %v166_v21  ;;  %v180_v31 = vmul.f32 %v179_v28, %v166_v21  ;;  %v132_v38 = vadd.f32 0.05243302, %v131_v32  ;;  %v122_v27 = vmul.f32 0.5, %v576_v13 }
  0xad   :  { %v143_v33 = vadd.f32 0.112945676, %v142_v29 }
  0xae   :  { %v170_v34 = vadd.f32 0.0036580483, %v169_v30  ;;  %v181_v35 = vadd.f32 0.014752088, %v180_v31  ;;  %v133_v44 = vmul.f32 %v132_v38, %v126_v12 }
  0xaf   :  { %v144_v36 = vmul.f32 %v143_v33, %v126_v12 }
  0xb0   :  { %v182_v37 = vmul.f32 %v181_v35, %v166_v21  ;;  %v171_v40 = vmul.f32 %v170_v34, %v166_v21  ;;  %v134_v49 = vadd.f32 0.18741608, %v133_v44  ;;  %v278_v44 = vld [vmem:[#allocation9 + $0x30] sm:$0xff] }
  0xb1   :  { %v145_v39 = vadd.f32 0.4994258, %v144_v36  ;;  %299 = vmatpush.msra.mxu1 %v278_v44 }
  0xb2   :  { %v183_v41 = vadd.f32 0.112945676, %v182_v37  ;;  %v172_v46 = vadd.f32 0.05243302, %v171_v40  ;;  %v135_v53 = vmul.f32 %v134_v49, %v126_v12 }
  0xb3   :  { %v146_v42 = vmul.f32 %v145_v39, %v126_v12 }
  0xb4   :  { %v184_v43 = vmul.f32 %v183_v41, %v166_v21  ;;  %v173_v50 = vmul.f32 %v172_v46, %v166_v21  ;;  %v136_v57 = vadd.f32 1.1283791, %v135_v53  ;;  %v276_v46 = vld [vmem:[#allocation9 + $0x20] sm:$0xff] }
  0xb5   :  { %v147_v45 = vadd.f32 1.0, %v146_v42  ;;  %300 = vmatpush.msra.mxu1 %v276_v46  ;;  %v272_v53 = vld [vmem:[#allocation9] sm:$0xff] }
  0xb6   :  { %v185_v47 = vadd.f32 0.4994258, %v184_v43  ;;  %v174_v54 = vadd.f32 0.18741608, %v173_v50  ;;  %v137_v1 = vmul.f32 %v136_v57, %v123_v9  ;;  %v274_v50 = vld [vmem:[#allocation9 + $0x10] sm:$0xff] }
  0xb7   :  { %383 = vrcp.f32 %v147_v45  ;;  %v159_v58 = vand.u32 2147483648, %v147_v45  ;;  %v157_v62 = vand.u32 2147483647, %v147_v45  ;;  %vm153_vm2 = vweird.f32 %v147_v45  ;;  %301 = vmatpush.msra.mxu1 %v274_v50 }
  0xb8   :  { %v186_v48 = vmul.f32 %v185_v47, %v166_v21  ;;  %v175_v60 = vmul.f32 %v174_v54, %v166_v21  ;;  %v277_v47 = vld [vmem:[#allocation9 + $0x28] sm:$0xff] }
  0xb9   :  { %v160_v2 = vor.u32 1.1754944e-38, %v159_v58  ;;  %vm158_vm4 = vcmp.eq.f32.partialorder %v157_v62, 8.507059e+37  ;;  %v273_v54 = vld [vmem:[#allocation9 + $0x8] sm:$0xff]  ;;  %302 = vmatpush.msra.mxu1 %v272_v53 }
  0xba   :  { %v187_v51 = vadd.f32 1.0, %v186_v48  ;;  %v176_v4 = vadd.f32 1.1283791, %v175_v60 }
  0xbc   :  { %385 = vrcp.f32 %v187_v51  ;;  %v199_v6 = vand.u32 2147483648, %v187_v51  ;;  %v197_v11 = vand.u32 2147483647, %v187_v51  ;;  %vm193_vm6 = vweird.f32 %v187_v51 }
  0xbd   :  { %v384_v52 = vpop.eup %383  ;;  %v177_v18 = vmul.f32 %v176_v4, %v579_v15  ;;  %v529_v15 = vmov 32.0  }
  0xbe   :  { %v149_v55 = vmul.f32 %v384_v52, %v147_v45  ;;  %vm154_vm1 = vweird.f32 %v384_v52  ;;  %v200_v17 = vor.u32 1.1754944e-38, %v199_v6  ;;  %vm198_vm8 = vcmp.eq.f32.partialorder %v197_v11, 8.507059e+37  ;;  %v279_v45 = vld [vmem:[#allocation9 + $0x38] sm:$0xff] }
  0xbf   :  { %vm155_vm3 = vmor %vm153_vm2, %vm154_vm1  ;;  %387 = vrcp.f32 %v529_v15  ;;  %322 = vmatpush.msra.mxu2 %v279_v45 }
  0xc0   :  { %v150_v56 = vsub.f32 1.0, %v149_v55 }
  0xc1   :  { %323 = vmatpush.msra.mxu2 %v277_v47 }
  0xc2   :  { %v386_v59 = vpop.eup %385  ;;  %v151_v61 = vmul.f32 %v384_v52, %v150_v56 }
  0xc3   :  { %v189_v63 = vmul.f32 %v386_v59, %v187_v51  ;;  %vm194_vm5 = vweird.f32 %v386_v59  ;;  %v275_v51 = vld [vmem:[#allocation9 + $0x18] sm:$0xff] }
  0xc4   :  { %v152_v0 = vadd.f32 %v384_v52, %v151_v61  ;;  %vm195_vm7 = vmor %vm193_vm6, %vm194_vm5  ;;  %324 = vmatpush.msra.mxu2 %v275_v51 }
  0xc5   :  { %v190_v3 = vsub.f32 1.0, %v189_v63  ;;  %v388_v30 = vpop.eup %387 }
  0xc6   :  { %v156_v5 = vsel %vm155_vm3, %v384_v52, %v152_v0  ;;  %v216_v31 = vmul.f32 32.0, %v388_v30  ;;  %vm220_vm9 = vweird.f32 %v388_v30  ;;  %325 = vmatpush.msra.mxu2 %v273_v54 }
  0xc7   :  { %v161_v7 = vsel %vm158_vm4, %v160_v2, %v156_v5  ;;  %v191_v10 = vmul.f32 %v386_v59, %v190_v3  ;;  %v381_v2 = vld [vmem:[#allocation8 + $0x1] ss:$0 sm:$0xff]  ;;  %v382_v5 = vld [vmem:[#allocation8 + $0x2] ss:$0 sm:$0xff] }
  0xc8   :  { %v162_v12 = vmul.f32 %v161_v7, %v137_v1  ;;  %v217_v8 = vsub.f32 1.0, %v216_v31 }
  0xc9   :  { %v192_v14 = vadd.f32 %v386_v59, %v191_v10 }
  0xca   :  { %v360_v16 = vclamps-f32 %v162_v12, 1.0  ;;  %v218_v32 = vmul.f32 %v388_v30, %v217_v8 }
  0xcb   :  { %v196_v9 = vsel %vm195_vm7, %v386_v59, %v192_v14 }
  0xcc   :  { %v205_v20 = vadd.f32 1.0, %v360_v16  ;;  %v201_v21 = vsel %vm198_vm8, %v200_v17, %v196_v9  ;;  %v219_v33 = vadd.f32 %v388_v30, %v218_v32 }
  0xcd   :  { %v202_v22 = vmul.f32 %v201_v21, %v177_v18 }
  0xce   :  { %v207_v23 = vmul.f32 %v205_v20, %v121_v19  ;;  %v221_v34 = vsel %vm220_vm9, %v388_v30, %v219_v33 }
  0xcf   :  { %v361_v24 = vclamps-f32 %v202_v22, 1.0 }
  0xd0   :  { %v209_v25 = vsel %vm91_vm0, %v207_v23, 0.0 }
  0xd1   :  { %210 = vadd.xlane.f32.xlu0 %v209_v25  ;;  %v206_v26 = vadd.f32 1.0, %v361_v24 }
  0xd3   :  { %v208_v28 = vmul.f32 %v206_v26, %v122_v27 }
  0xd5   :  { %v212_v29 = vsel %vm91_vm0, %v208_v28, 0.0 }
  0xd9   :  { %213 = vadd.xlane.f32.xlu0 %v212_v29 }
 0x144   :  { %v211_v35 = vpop.xlane.xlu0 %210 }
 0x145   :  { %v222_v36 = vmul.f32 %v221_v34, %v211_v35 }
 0x147   :  { %v224_v37 = vsub.f32 %v207_v23, %v222_v36 }
 0x149   :  { %v226_v38 = vmul.f32 %v224_v37, %v224_v37 }
 0x14b   :  { %v228_v39 = vsel %vm91_vm0, %v226_v38, 0.0 }
 0x14c   :  { %229 = vadd.xlane.f32.xlu1 %v228_v39  ;;  %v214_v13 = vpop.xlane.xlu0 %213 }
 0x14d   :  { %v223_v40 = vmul.f32 %v221_v34, %v214_v13 }
 0x14f   :  { %v225_v41 = vsub.f32 %v208_v28, %v223_v40 }
 0x151   :  { %v227_v42 = vmul.f32 %v225_v41, %v225_v41 }
 0x153   :  { %v231_v43 = vsel %vm91_vm0, %v227_v42, 0.0 }
 0x154   :  { %232 = vadd.xlane.f32.xlu1 %v231_v43 }
 0x1bf   :  { %v230_v48 = vpop.xlane.xlu1 %229 }
 0x1c0   :  { %v234_v49 = vmul.f32 %v230_v48, %v221_v34 }
 0x1c2   :  { %v236_v52 = vadd.f32 1e-05, %v234_v49 }
 0x1c4   :  { %389 = vrsqrt.f32 %v236_v52  ;;  %vm244_vm11 = vweird.f32 %v236_v52 }
 0x1c7   :  { %v233_v55 = vpop.xlane.xlu1 %232 }
 0x1c8   :  { %v235_v56 = vmul.f32 %v233_v55, %v221_v34 }
 0x1ca   :  { %v390_v57 = vpop.eup %389  ;;  %v237_v58 = vadd.f32 1e-05, %v235_v56 }
 0x1cb   :  { %v239_v59 = vmul.f32 %v390_v57, %v236_v52  ;;  %vm245_vm10 = vweird.f32 %v390_v57 }
 0x1cc   :  { %391 = vrsqrt.f32 %v237_v58  ;;  %vm246_vm12 = vmor %vm244_vm11, %vm245_vm10  ;;  %vm254_vm14 = vweird.f32 %v237_v58 }
 0x1cd   :  { %v240_v60 = vmul.f32 %v390_v57, %v239_v59 }
 0x1cf   :  { %v241_v61 = vmul.f32 0.5, %v240_v60 }
 0x1d1   :  { %v242_v62 = vsub.f32 1.5, %v241_v61 }
 0x1d2   :  { %v392_v63 = vpop.eup %391 }
 0x1d3   :  { %v243_v0 = vmul.f32 %v390_v57, %v242_v62  ;;  %v249_v1 = vmul.f32 %v392_v63, %v237_v58  ;;  %vm255_vm13 = vweird.f32 %v392_v63 }
 0x1d4   :  { %vm256_vm15 = vmor %vm254_vm14, %vm255_vm13 }
 0x1d5   :  { %v247_v3 = vsel %vm246_vm12, %v390_v57, %v243_v0  ;;  %v250_v4 = vmul.f32 %v392_v63, %v249_v1 }
 0x1d6   :  { %v258_v6 = vmul.f32 %v247_v3, %v224_v37 }
 0x1d7   :  { %v251_v7 = vmul.f32 0.5, %v250_v4 }
 0x1d8   :  { %v262_v10 = vmul.f32 %v381_v2, %v258_v6 }
 0x1d9   :  { %v252_v11 = vsub.f32 1.5, %v251_v7 }
 0x1da   :  { %v266_v12 = vadd.f32 %v382_v5, %v262_v10 }
 0x1db   :  { %v253_v14 = vmul.f32 %v392_v63, %v252_v11 }
 0x1dc   :  { %268 = vst.msk [vmem:[#allocation2] sm:$0xff] %vm91_vm0, %v266_v12 }
 0x1dd   :  { %v257_v16 = vsel %vm256_vm15, %v392_v63, %v253_v14 }
 0x1de   :  { %v259_v17 = vmul.f32 %v257_v16, %v225_v41 }
 0x1e0   :  { %v263_v18 = vmul.f32 %v381_v2, %v259_v17 }
 0x1e2   :  { %v267_v9 = vadd.f32 %v382_v5, %v263_v18 }
 0x1e3   :  { %v270_v19 = vld [vmem:[#allocation2] sm:$0xff] }
 0x1e4   :  { %269 = vst.msk [vmem:[#allocation2 + $0x8] sm:$0xff] %vm91_vm0, %v267_v9  ;;  %362 = vmatmul.msk.f32.vlgmr.msra.gmra.mxu1 %vm91_vm0, %v270_v19  ;;  %364 = vmatmul.msk.f32.vlgmr.msra.gmra.mxu2 %vm91_vm0, %v270_v19 }
 0x1eb   :  { %v271_v20 = vld [vmem:[#allocation2 + $0x8] sm:$0xff] }
 0x1ec   :  { %363 = vmatmul.msk.f32.gmra.mxu1 %vm91_vm0, %v271_v20  ;;  %365 = vmatmul.msk.f32.gmra.mxu2 %vm91_vm0, %v271_v20 }
 0x261   :  { %v304_v21 = vpop.f32.mrf.mxu1 }
 0x262   :  { %333 = vst [vmem:[#allocation11] sm:$0xff] %v304_v21 }
 0x267   :  { %v327_v22 = vpop.f32.mrf.mxu2 }
 0x268   :  { %334 = vst [vmem:[#allocation11 + $0x8] sm:$0xff] %v327_v22 }
 0x269   :  { %v307_v23 = vpop.f32.mrf.mxu1 }
 0x26a   :  { %335 = vst [vmem:[#allocation11 + $0x10] sm:$0xff] %v307_v23 }
 0x26f   :  { %v330_v24 = vpop.f32.mrf.mxu2 }
 0x270   :  { %336 = vst [vmem:[#allocation11 + $0x18] sm:$0xff] %v330_v24 }
 0x271   :  { %349 = dma.vmem_to_hbm [thread:$0]  %s342_s3, 512, %s344_s13, [#allocation5], %s527_s9, %s527_s9, %s528_s10  }
 0x272   :  { %519 = dma.done.wait [#allocation5], 512  }
 0x273   :  { %520 = vsyncadd [#allocation5], 4294966784 }
 0x274   :  { %354 = vsyncpa [#allocation4], 1 }
 0x275   :  { %355 = vsyncpa [#allocation7], 1 }
 0x276   :  { %356 = vsyncpa [#allocation10], 1 }
 0x277   :  { %357 = vsyncpa [#allocation5], 1 }

// kernel: tpu_custom_call.1
= control target key start
LH: loop header
LB: loop body
LE: loop exit
PB: predicated region body
PF: predicated region fallthrough
CT: control target
= control target key end

     0   :  { %9 = vsyncpa [#allocation4], 0  ;;  %s602_s0 = inlined_call_operand.hbm [shape: f32[16,32], index: 0, kind: input, shape index: {}]   ;;  %s603_s1 = inlined_call_operand.hbm [shape: f32[32,32], index: 1, kind: input, shape index: {}]   ;;  %s604_s2 = inlined_call_operand.hbm [shape: f32[3,32], index: 2, kind: input, shape index: {}]   ;;  %s605_s3 = inlined_call_operand.hbm [shape: f32[32,256], index: 3, kind: input, shape index: {}]   ;;  %s606_s4 = inlined_call_operand.hbm [shape: f32[16,256], index: 4, kind: output, shape index: {}]  }
   0x1   :  { %10 = vsyncpa [#allocation7], 0 }
   0x2   :  { %11 = vsyncpa [#allocation10], 0 }
   0x3   :  { %12 = vsyncpa [#allocation5], 0  ;;  %s30_s17 = sshll.u32 %s603_s1, 4  ;;  %s521_s18 = smov [#allocation6]   ;;  %s31_s17 = int_to_ptr.hbm [resolvable:$true] %s30_s17 }
   0x4   :  { %s32_s19 = sshll.u32 %s521_s18, 4  ;;  %s17_s22 = sshll.u32 %s602_s0, 4  ;;  %s33_s19 = int_to_ptr.vmem [resolvable:$true] %s32_s19  ;;  %s18_s22 = int_to_ptr.hbm [resolvable:$true] %s17_s22 }
   0x5   :  { %s522_s23 = smov 128   ;;  %s523_s24 = smov 8  }
   0x6   :  { %38 = dma.hbm_to_vmem [thread:$0]  %s31_s17, 512, %s33_s19, [#allocation7], %s522_s23, %s522_s23, %s523_s24  }
   0x7   :  { %s524_s25 = smov [#allocation3]   ;;  %s44_s29 = sshll.u32 %s604_s2, 4  ;;  %s45_s29 = int_to_ptr.hbm [resolvable:$true] %s44_s29 }
   0x8   :  { %s19_s26 = sshll.u32 %s524_s25, 4  ;;  %s54_s5 = sshll.u32 %s605_s3, 4  ;;  %s20_s26 = int_to_ptr.vmem [resolvable:$true] %s19_s26  ;;  %s55_s5 = int_to_ptr.hbm [resolvable:$true] %s54_s5 }
   0x9   :  { %25 = dma.hbm_to_vmem [thread:$0]  %s18_s22, 256, %s20_s26, [#allocation4], %s522_s23, %s522_s23, %s523_s24  }
   0xa   :  { %s525_s6 = smov [#allocation8]   ;;  %s526_s0 = smov [#allocation9]  }
   0xb   :  { %s46_s7 = sshll.u32 %s525_s6, 4  ;;  %s56_s8 = sshll.u32 %s526_s0, 4  ;;  %s47_s7 = int_to_ptr.vmem [resolvable:$true] %s46_s7  ;;  %s57_s8 = int_to_ptr.vmem [resolvable:$true] %s56_s8 }
   0xc   :  { %49 = dma.hbm_to_vmem [thread:$0]  %s45_s29, 64, %s47_s7, [#allocation7]  }
   0xd   :  { %s527_s9 = smov 256   ;;  %s528_s10 = smov 16  }
   0xe   :  { %62 = dma.hbm_to_vmem [thread:$0]  %s55_s5, 1024, %s57_s8, [#allocation10], %s527_s9, %s527_s9, %s528_s10  }
   0xf   :  { %513 = dma.done.wait [#allocation4], 256  }
  0x10   :  { %514 = vsyncadd [#allocation4], 4294967040 }
  0x11   :  { %515 = dma.done.wait [#allocation7], 576  }
  0x12   :  { %516 = vsyncadd [#allocation7], 4294966720 }
  0x13   :  { %517 = dma.done.wait [#allocation10], 1024  }
  0x14   :  { %518 = vsyncadd [#allocation10], 4294966272  ;;  %v88_v0 = vld [vmem:[#allocation6 + $0x18] sm:$0xff]  ;;  %v87_v1 = vld [vmem:[#allocation6 + $0x10] sm:$0xff]  ;;  %vm91_vm0 = vcmask 261120   ;;  %s530_s2 = smov [#allocation11]  }
  0x15   :  { %110 = vmatpush.msra.mxu0 %v88_v0  ;;  %366 = vmatpush.msra.mxu3 %v88_v0  ;;  %v86_v2 = vld [vmem:[#allocation6 + $0x8] sm:$0xff]  ;;  %v85_v3 = vld [vmem:[#allocation6] sm:$0xff]  ;;  %v83_v4 = vld [vmem:[#allocation3] sm:$0xff]  ;;  %s341_s3 = sshll.u32 %s530_s2, 4  ;;  %s343_s13 = sshll.u32 %s606_s4, 4  ;;  %s342_s3 = int_to_ptr.vmem [resolvable:$true] %s341_s3  ;;  %s344_s13 = int_to_ptr.hbm [resolvable:$true] %s343_s13 }
  0x16   :  { %v84_v5 = vld [vmem:[#allocation3 + $0x8] sm:$0xff]  ;;  %v380_v6 = vld [vmem:[#allocation8] ss:$0 sm:$0xff] }
  0x17   :  { %111 = vmatpush.msra.mxu0 %v87_v1  ;;  %367 = vmatpush.msra.mxu3 %v87_v1 }
  0x19   :  { %112 = vmatpush.msra.mxu0 %v86_v2  ;;  %368 = vmatpush.msra.mxu3 %v86_v2 }
  0x1b   :  { %113 = vmatpush.msra.mxu0 %v85_v3  ;;  %369 = vmatpush.msra.mxu3 %v85_v3 }
  0x1c   :  { %358 = vmatmul.msk.f32.vlgmr.msra.gmra.mxu0 %vm91_vm0, %v83_v4  ;;  %359 = vmatmul.msk.f32.vlgmr.msra.gmra.mxu3 %vm91_vm0, %v84_v5 }
  0x99   :  { %v115_v7 = vpop.f32.mrf.mxu0 }
  0x9a   :  { %v573_v8 = vadd.f32 %v380_v6, %v115_v7 }
  0x9c   :  { %v123_v9 = vmul.f32 0.70710677, %v573_v8 }
  0x9e   :  { %v125_v10 = vmul.f32 %v123_v9, %v123_v9 }
  0x9f   :  { %v118_v11 = vpop.f32.mrf.mxu3 }
  0xa0   :  { %v126_v12 = vmin.f32 %v125_v10, 16.0  ;;  %v576_v13 = vadd.f32 %v380_v6, %v118_v11 }
  0xa2   :  { %v127_v14 = vmul.f32 2.1237322e-06, %v126_v12  ;;  %v579_v15 = vmul.f32 0.70710677, %v576_v13  ;;  %v138_v16 = vmul.f32 3.8918573e-05, %v126_v12 }
  0xa4   :  { %v128_v17 = vadd.f32 0.00028619796, %v127_v14  ;;  %v165_v18 = vmul.f32 %v579_v15, %v579_v15  ;;  %v139_v19 = vadd.f32 0.001143296, %v138_v16 }
  0xa6   :  { %v129_v20 = vmul.f32 %v128_v17, %v126_v12  ;;  %v166_v21 = vmin.f32 %v165_v18, 16.0  ;;  %v140_v22 = vmul.f32 %v139_v19, %v126_v12  ;;  %v121_v19 = vmul.f32 0.5, %v573_v8 }
  0xa8   :  { %v167_v23 = vmul.f32 2.1237322e-06, %v166_v21  ;;  %v178_v24 = vmul.f32 3.8918573e-05, %v166_v21  ;;  %v130_v25 = vadd.f32 0.0036580483, %v129_v20 }
  0xa9   :  { %v141_v26 = vadd.f32 0.014752088, %v140_v22 }
  0xaa   :  { %v168_v27 = vadd.f32 0.00028619796, %v167_v23  ;;  %v179_v28 = vadd.f32 0.001143296, %v178_v24  ;;  %v131_v32 = vmul.f32 %v130_v25, %v126_v12 }
  0xab   :  { %v142_v29 = vmul.f32 %v141_v26, %v126_v12 }
  0xac   :  { %v169_v30 = vmul.f32 %v168_v27, %v166_v21  ;;  %v180_v31 = vmul.f32 %v179_v28, %v166_v21  ;;  %v132_v38 = vadd.f32 0.05243302, %v131_v32  ;;  %v122_v27 = vmul.f32 0.5, %v576_v13 }
  0xad   :  { %v143_v33 = vadd.f32 0.112945676, %v142_v29 }
  0xae   :  { %v170_v34 = vadd.f32 0.0036580483, %v169_v30  ;;  %v181_v35 = vadd.f32 0.014752088, %v180_v31  ;;  %v133_v44 = vmul.f32 %v132_v38, %v126_v12 }
  0xaf   :  { %v144_v36 = vmul.f32 %v143_v33, %v126_v12 }
  0xb0   :  { %v182_v37 = vmul.f32 %v181_v35, %v166_v21  ;;  %v171_v40 = vmul.f32 %v170_v34, %v166_v21  ;;  %v134_v49 = vadd.f32 0.18741608, %v133_v44  ;;  %v278_v44 = vld [vmem:[#allocation9 + $0x30] sm:$0xff] }
  0xb1   :  { %v145_v39 = vadd.f32 0.4994258, %v144_v36  ;;  %299 = vmatpush.msra.mxu1 %v278_v44 }
  0xb2   :  { %v183_v41 = vadd.f32 0.112945676, %v182_v37  ;;  %v172_v46 = vadd.f32 0.05243302, %v171_v40  ;;  %v135_v53 = vmul.f32 %v134_v49, %v126_v12 }
  0xb3   :  { %v146_v42 = vmul.f32 %v145_v39, %v126_v12 }
  0xb4   :  { %v184_v43 = vmul.f32 %v183_v41, %v166_v21  ;;  %v173_v50 = vmul.f32 %v172_v46, %v166_v21  ;;  %v136_v57 = vadd.f32 1.1283791, %v135_v53  ;;  %v276_v46 = vld [vmem:[#allocation9 + $0x20] sm:$0xff] }
  0xb5   :  { %v147_v45 = vadd.f32 1.0, %v146_v42  ;;  %300 = vmatpush.msra.mxu1 %v276_v46  ;;  %v272_v53 = vld [vmem:[#allocation9] sm:$0xff] }
  0xb6   :  { %v185_v47 = vadd.f32 0.4994258, %v184_v43  ;;  %v174_v54 = vadd.f32 0.18741608, %v173_v50  ;;  %v137_v1 = vmul.f32 %v136_v57, %v123_v9  ;;  %v274_v50 = vld [vmem:[#allocation9 + $0x10] sm:$0xff] }
  0xb7   :  { %383 = vrcp.f32 %v147_v45  ;;  %v159_v58 = vand.u32 2147483648, %v147_v45  ;;  %v157_v62 = vand.u32 2147483647, %v147_v45  ;;  %vm153_vm2 = vweird.f32 %v147_v45  ;;  %301 = vmatpush.msra.mxu1 %v274_v50 }
  0xb8   :  { %v186_v48 = vmul.f32 %v185_v47, %v166_v21  ;;  %v175_v60 = vmul.f32 %v174_v54, %v166_v21  ;;  %v277_v47 = vld [vmem:[#allocation9 + $0x28] sm:$0xff] }
  0xb9   :  { %v160_v2 = vor.u32 1.1754944e-38, %v159_v58  ;;  %vm158_vm4 = vcmp.eq.f32.partialorder %v157_v62, 8.507059e+37  ;;  %v273_v54 = vld [vmem:[#allocation9 + $0x8] sm:$0xff]  ;;  %302 = vmatpush.msra.mxu1 %v272_v53 }
  0xba   :  { %v187_v51 = vadd.f32 1.0, %v186_v48  ;;  %v176_v4 = vadd.f32 1.1283791, %v175_v60 }
  0xbc   :  { %385 = vrcp.f32 %v187_v51  ;;  %v199_v6 = vand.u32 2147483648, %v187_v51  ;;  %v197_v11 = vand.u32 2147483647, %v187_v51  ;;  %vm193_vm6 = vweird.f32 %v187_v51 }
  0xbd   :  { %v384_v52 = vpop.eup %383  ;;  %v177_v18 = vmul.f32 %v176_v4, %v579_v15  ;;  %v529_v15 = vmov 32.0  }
  0xbe   :  { %v149_v55 = vmul.f32 %v384_v52, %v147_v45  ;;  %vm154_vm1 = vweird.f32 %v384_v52  ;;  %v200_v17 = vor.u32 1.1754944e-38, %v199_v6  ;;  %vm198_vm8 = vcmp.eq.f32.partialorder %v197_v11, 8.507059e+37  ;;  %v279_v45 = vld [vmem:[#allocation9 + $0x38] sm:$0xff] }
  0xbf   :  { %vm155_vm3 = vmor %vm153_vm2, %vm154_vm1  ;;  %387 = vrcp.f32 %v529_v15  ;;  %322 = vmatpush.msra.mxu2 %v279_v45 }
  0xc0   :  { %v150_v56 = vsub.f32 1.0, %v149_v55 }
  0xc1   :  { %323 = vmatpush.msra.mxu2 %v277_v47 }
  0xc2   :  { %v386_v59 = vpop.eup %385  ;;  %v151_v61 = vmul.f32 %v384_v52, %v150_v56 }
  0xc3   :  { %v189_v63 = vmul.f32 %v386_v59, %v187_v51  ;;  %vm194_vm5 = vweird.f32 %v386_v59  ;;  %v275_v51 = vld [vmem:[#allocation9 + $0x18] sm:$0xff] }
  0xc4   :  { %v152_v0 = vadd.f32 %v384_v52, %v151_v61  ;;  %vm195_vm7 = vmor %vm193_vm6, %vm194_vm5  ;;  %324 = vmatpush.msra.mxu2 %v275_v51 }
  0xc5   :  { %v190_v3 = vsub.f32 1.0, %v189_v63  ;;  %v388_v30 = vpop.eup %387 }
  0xc6   :  { %v156_v5 = vsel %vm155_vm3, %v384_v52, %v152_v0  ;;  %v216_v31 = vmul.f32 32.0, %v388_v30  ;;  %vm220_vm9 = vweird.f32 %v388_v30  ;;  %325 = vmatpush.msra.mxu2 %v273_v54 }
  0xc7   :  { %v161_v7 = vsel %vm158_vm4, %v160_v2, %v156_v5  ;;  %v191_v10 = vmul.f32 %v386_v59, %v190_v3  ;;  %v381_v2 = vld [vmem:[#allocation8 + $0x1] ss:$0 sm:$0xff]  ;;  %v382_v5 = vld [vmem:[#allocation8 + $0x2] ss:$0 sm:$0xff] }
  0xc8   :  { %v162_v12 = vmul.f32 %v161_v7, %v137_v1  ;;  %v217_v8 = vsub.f32 1.0, %v216_v31 }
  0xc9   :  { %v192_v14 = vadd.f32 %v386_v59, %v191_v10 }
  0xca   :  { %v360_v16 = vclamps-f32 %v162_v12, 1.0  ;;  %v218_v32 = vmul.f32 %v388_v30, %v217_v8 }
  0xcb   :  { %v196_v9 = vsel %vm195_vm7, %v386_v59, %v192_v14 }
  0xcc   :  { %v205_v20 = vadd.f32 1.0, %v360_v16  ;;  %v201_v21 = vsel %vm198_vm8, %v200_v17, %v196_v9  ;;  %v219_v33 = vadd.f32 %v388_v30, %v218_v32 }
  0xcd   :  { %v202_v22 = vmul.f32 %v201_v21, %v177_v18 }
  0xce   :  { %v207_v23 = vmul.f32 %v205_v20, %v121_v19  ;;  %v221_v34 = vsel %vm220_vm9, %v388_v30, %v219_v33 }
  0xcf   :  { %v361_v24 = vclamps-f32 %v202_v22, 1.0 }
  0xd0   :  { %v209_v25 = vsel %vm91_vm0, %v207_v23, 0.0 }
  0xd1   :  { %210 = vadd.xlane.f32.xlu0 %v209_v25  ;;  %v206_v26 = vadd.f32 1.0, %v361_v24 }
  0xd3   :  { %v208_v28 = vmul.f32 %v206_v26, %v122_v27 }
  0xd5   :  { %v212_v29 = vsel %vm91_vm0, %v208_v28, 0.0 }
  0xd9   :  { %213 = vadd.xlane.f32.xlu0 %v212_v29 }
 0x144   :  { %v211_v35 = vpop.xlane.xlu0 %210 }
 0x145   :  { %v222_v36 = vmul.f32 %v221_v34, %v211_v35 }
 0x147   :  { %v224_v37 = vsub.f32 %v207_v23, %v222_v36 }
 0x149   :  { %v226_v38 = vmul.f32 %v224_v37, %v224_v37 }
 0x14b   :  { %v228_v39 = vsel %vm91_vm0, %v226_v38, 0.0 }
 0x14c   :  { %229 = vadd.xlane.f32.xlu1 %v228_v39  ;;  %v214_v13 = vpop.xlane.xlu0 %213 }
 0x14d   :  { %v223_v40 = vmul.f32 %v221_v34, %v214_v13 }
 0x14f   :  { %v225_v41 = vsub.f32 %v208_v28, %v223_v40 }
 0x151   :  { %v227_v42 = vmul.f32 %v225_v41, %v225_v41 }
 0x153   :  { %v231_v43 = vsel %vm91_vm0, %v227_v42, 0.0 }
 0x154   :  { %232 = vadd.xlane.f32.xlu1 %v231_v43 }
 0x1bf   :  { %v230_v48 = vpop.xlane.xlu1 %229 }
 0x1c0   :  { %v234_v49 = vmul.f32 %v230_v48, %v221_v34 }
 0x1c2   :  { %v236_v52 = vadd.f32 1e-05, %v234_v49 }
 0x1c4   :  { %389 = vrsqrt.f32 %v236_v52  ;;  %vm244_vm11 = vweird.f32 %v236_v52 }
 0x1c7   :  { %v233_v55 = vpop.xlane.xlu1 %232 }
 0x1c8   :  { %v235_v56 = vmul.f32 %v233_v55, %v221_v34 }
 0x1ca   :  { %v390_v57 = vpop.eup %389  ;;  %v237_v58 = vadd.f32 1e-05, %v235_v56 }
 0x1cb   :  { %v239_v59 = vmul.f32 %v390_v57, %v236_v52  ;;  %vm245_vm10 = vweird.f32 %v390_v57 }
 0x1cc   :  { %391 = vrsqrt.f32 %v237_v58  ;;  %vm246_vm12 = vmor %vm244_vm11, %vm245_vm10  ;;  %vm254_vm14 = vweird.f32 %v237_v58 }
 0x1cd   :  { %v240_v60 = vmul.f32 %v390_v57, %v239_v59 }
 0x1cf   :  { %v241_v61 = vmul.f32 0.5, %v240_v60 }
 0x1d1   :  { %v242_v62 = vsub.f32 1.5, %v241_v61 }
 0x1d2   :  { %v392_v63 = vpop.eup %391 }
 0x1d3   :  { %v243_v0 = vmul.f32 %v390_v57, %v242_v62  ;;  %v249_v1 = vmul.f32 %v392_v63, %v237_v58  ;;  %vm255_vm13 = vweird.f32 %v392_v63 }
 0x1d4   :  { %vm256_vm15 = vmor %vm254_vm14, %vm255_vm13 }
 0x1d5   :  { %v247_v3 = vsel %vm246_vm12, %v390_v57, %v243_v0  ;;  %v250_v4 = vmul.f32 %v392_v63, %v249_v1 }
 0x1d6   :  { %v258_v6 = vmul.f32 %v247_v3, %v224_v37 }
 0x1d7   :  { %v251_v7 = vmul.f32 0.5, %v250_v4 }
 0x1d8   :  { %v262_v10 = vmul.f32 %v381_v2, %v258_v6 }
 0x1d9   :  { %v252_v11 = vsub.f32 1.5, %v251_v7 }
 0x1da   :  { %v266_v12 = vadd.f32 %v382_v5, %v262_v10 }
 0x1db   :  { %v253_v14 = vmul.f32 %v392_v63, %v252_v11 }
 0x1dc   :  { %268 = vst.msk [vmem:[#allocation2] sm:$0xff] %vm91_vm0, %v266_v12 }
 0x1dd   :  { %v257_v16 = vsel %vm256_vm15, %v392_v63, %v253_v14 }
 0x1de   :  { %v259_v17 = vmul.f32 %v257_v16, %v225_v41 }
 0x1e0   :  { %v263_v18 = vmul.f32 %v381_v2, %v259_v17 }
 0x1e2   :  { %v267_v9 = vadd.f32 %v382_v5, %v263_v18 }
 0x1e3   :  { %v270_v19 = vld [vmem:[#allocation2] sm:$0xff] }
 0x1e4   :  { %269 = vst.msk [vmem:[#allocation2 + $0x8] sm:$0xff] %vm91_vm0, %v267_v9  ;;  %362 = vmatmul.msk.f32.vlgmr.msra.gmra.mxu1 %vm91_vm0, %v270_v19  ;;  %364 = vmatmul.msk.f32.vlgmr.msra.gmra.mxu2 %vm91_vm0, %v270_v19 }
 0x1eb   :  { %v271_v20 = vld [vmem:[#allocation2 + $0x8] sm:$0xff] }
 0x1ec   :  { %363 = vmatmul.msk.f32.gmra.mxu1 %vm91_vm0, %v271_v20  ;;  %365 = vmatmul.msk.f32.gmra.mxu2 %vm91_vm0, %v271_v20 }
 0x261   :  { %v304_v21 = vpop.f32.mrf.mxu1 }
 0x262   :  { %333 = vst [vmem:[#allocation11] sm:$0xff] %v304_v21 }
 0x267   :  { %v327_v22 = vpop.f32.mrf.mxu2 }
 0x268   :  { %334 = vst [vmem:[#allocation11 + $0x8] sm:$0xff] %v327_v22 }
 0x269   :  { %v307_v23 = vpop.f32.mrf.mxu1 }
 0x26a   :  { %335 = vst [vmem:[#allocation11 + $0x10] sm:$0xff] %v307_v23 }
 0x26f   :  { %v330_v24 = vpop.f32.mrf.mxu2 }
 0x270   :  { %336 = vst [vmem:[#allocation11 + $0x18] sm:$0xff] %v330_v24 }
 0x271   :  { %349 = dma.vmem_to_hbm [thread:$0]  %s342_s3, 512, %s344_s13, [#allocation5], %s527_s9, %s527_s9, %s528_s10  }
 0x272   :  { %519 = dma.done.wait [#allocation5], 512  }
 0x273   :  { %520 = vsyncadd [#allocation5], 4294966784 }
 0x274   :  { %354 = vsyncpa [#allocation4], 1 }
 0x275   :  { %355 = vsyncpa [#allocation7], 1 }
 0x276   :  { %356 = vsyncpa [#allocation10], 1 }
 0x277   :  { %357 = vsyncpa [#allocation5], 1 }

</bundles_post_ra>
